<compile_context>
chip_gen: v7x
topology: tpu7x:2x2x1
jax: 0.10.0
libtpu: 0.0.40
codegen_flags: <defaults>
</compile_context>

<pallas_src>
import functools

import jax
import jax.numpy as jnp
from jax.experimental import pallas as pl
from jax.experimental.pallas import tpu as pltpu

_OUT_PAD = 128  # lane-dense output width; real logits live in columns 0:2


def _round_up(n, m):
    return ((n + m - 1) // m) * m


def _disc_mlp_kernel(x_ref, w1_ref, b1_ref, w2_ref, b2_ref, w3_ref, b3_ref, o_ref):
    """Fused 3-layer MLP on one batch tile: (Linear+ReLU) x2 -> Linear."""
    x = x_ref[...]  # bf16 [bt, F]
    # Layer 1: bf16 MXU matmul, f32 accumulate; bias + ReLU kept in f32.
    h1 = jnp.dot(x, w1_ref[...], preferred_element_type=jnp.float32) + b1_ref[...]
    h1 = jnp.maximum(h1, 0.0)
    # Layer 2: Linear(H, H) + ReLU
    h2 = jnp.dot(h1.astype(jnp.bfloat16), w2_ref[...],
                 preferred_element_type=jnp.float32) + b2_ref[...]
    h2 = jnp.maximum(h2, 0.0)
    # Layer 3: Linear(H, 128-padded) -> lane-dense store (no activation)
    o_ref[...] = (
        jnp.dot(h2.astype(jnp.bfloat16), w3_ref[...],
                preferred_element_type=jnp.float32) + b3_ref[...]
    ).astype(o_ref.dtype)


def _spec(shape, index_map, mode):
    # Only pass pipeline_mode when explicitly requested (multi-step grids).
    if mode is None:
        return pl.BlockSpec(shape, index_map)
    return pl.BlockSpec(shape, index_map, pipeline_mode=mode)


@functools.partial(jax.jit, static_argnames=("batch_tile",))
def discriminator_forward(x, params, batch_tile=256):
    """Run the Discriminator MLP with a single fused Pallas kernel.

    x:       [B, F] float32
    params:  dict of pre-transposed weights/biases (see init_discriminator_params)
    returns: [B, 2] float32 logits
    """
    assert batch_tile % 8 == 0, "batch_tile must be a multiple of 8 (sublanes)"

    # bf16 MXU operands; biases stay f32 (added to the f32 accumulator).
    w1 = params["w1"].astype(jnp.bfloat16)
    b1 = params["b1"].astype(jnp.float32)
    w2 = params["w2"].astype(jnp.bfloat16)
    b2 = params["b2"].astype(jnp.float32)
    w3 = params["w3"].astype(jnp.bfloat16)
    b3 = params["b3"].astype(jnp.float32)

    B, F = x.shape
    H = w1.shape[1]
    n_out = w3.shape[1]

    # Lane-dense output: pad the last layer's width to 128 (zero columns are
    # exact zeros in the output and get sliced away below).
    w3p = jnp.zeros((H, _OUT_PAD), jnp.bfloat16).at[:, :n_out].set(w3)
    b3p = jnp.zeros((1, _OUT_PAD), jnp.float32).at[:, :n_out].set(b3)

    # Batch padding / tiling. Pad to a multiple of 16 so halving stays 8-aligned.
    b_pad = _round_up(B, 16)
    bt = min(batch_tile, b_pad)
    if b_pad // bt < 2 and b_pad >= 256:
        # v7x has 2 TensorCores: keep >= 2 parallel grid blocks for large B
        # instead of collapsing to grid=(1,).
        bt = b_pad // 2
    b_pad = _round_up(b_pad, bt)
    grid_steps = b_pad // bt

    xb = x.astype(jnp.bfloat16)
    if b_pad != B:
        xb = jnp.pad(xb, ((0, b_pad - B), (0, 0)))

    # Pipeline-depth tuning only matters once the grid actually pipelines.
    multi_step = grid_steps >= 3
    x_mode = pl.Buffered(3) if multi_step else None   # deeper buffering on the streamed input
    w_mode = pl.Buffered(1) if multi_step else None   # don't double-buffer replicated weights

    cost = pl.CostEstimate(
        flops=2 * b_pad * (F * H + H * H + H * _OUT_PAD),
        transcendentals=0,
        bytes_accessed=(
            xb.size * 2                                   # bf16 input
            + (w1.size + w2.size + w3p.size) * 2          # bf16 weights
            + (b1.size + b2.size + b3p.size) * 4          # f32 biases
            + b_pad * _OUT_PAD * 4                        # f32 output
        ),
    )

    out = pl.pallas_call(
        _disc_mlp_kernel,
        out_shape=jax.ShapeDtypeStruct((b_pad, _OUT_PAD), jnp.float32),
        grid_spec=pltpu.PrefetchScalarGridSpec(
            num_scalar_prefetch=0,
            grid=(grid_steps,),
            in_specs=[
                _spec((bt, F), lambda i: (i, 0), x_mode),        # x tile (streamed)
                _spec((F, H), lambda i: (0, 0), w_mode),         # w1 (replicated)
                _spec((1, H), lambda i: (0, 0), w_mode),         # b1
                _spec((H, H), lambda i: (0, 0), w_mode),         # w2
                _spec((1, H), lambda i: (0, 0), w_mode),         # b2
                _spec((H, _OUT_PAD), lambda i: (0, 0), w_mode),  # w3 (padded)
                _spec((1, _OUT_PAD), lambda i: (0, 0), w_mode),  # b3 (padded)
            ],
            out_specs=pl.BlockSpec((bt, _OUT_PAD), lambda i: (i, 0)),
        ),
        compiler_params=pltpu.CompilerParams(
            dimension_semantics=("parallel",),
        ),
        cost_estimate=cost,
    )(xb, w1, b1, w2, b2, w3p, b3p)

    return out[:B, :n_out]


def init_discriminator_params(key, in_dim, hid_dim, out_dim=2):
    """Deterministic parameter init (PyTorch-Linear-style uniform fan-in scaling).

    Weights are stored transposed: [in_dim, out_dim].
    """
    k1, k2, k3, k4, k5, k6 = jax.random.split(key, 6)

    def u(k, shape, fan_in):
        bound = 1.0 / jnp.sqrt(fan_in)
        return jax.random.uniform(k, shape, jnp.float32, -bound, bound)

    return {
        "w1": u(k1, (in_dim, hid_dim), in_dim),
        "b1": u(k2, (1, hid_dim), in_dim),
        "w2": u(k3, (hid_dim, hid_dim), hid_dim),
        "b2": u(k4, (1, hid_dim), hid_dim),
        "w3": u(k5, (hid_dim, out_dim), hid_dim),
        "b3": u(k6, (1, out_dim), hid_dim),
    }


def _reference_forward_f32(x, p):
    """Pure-f32 reference (exact PyTorch math)."""
    h1 = jnp.maximum(x @ p["w1"] + p["b1"], 0.0)
    h2 = jnp.maximum(h1 @ p["w2"] + p["b2"], 0.0)
    return h2 @ p["w3"] + p["b3"]


def _reference_forward_bf16(x, p):
    """Reference with the same bf16-operand / f32-accumulate math as the kernel."""
    w1 = p["w1"].astype(jnp.bfloat16)
    w2 = p["w2"].astype(jnp.bfloat16)
    w3 = p["w3"].astype(jnp.bfloat16)
    h1 = jnp.maximum(
        jnp.dot(x.astype(jnp.bfloat16), w1, preferred_element_type=jnp.float32)
        + p["b1"], 0.0)
    h2 = jnp.maximum(
        jnp.dot(h1.astype(jnp.bfloat16), w2, preferred_element_type=jnp.float32)
        + p["b2"], 0.0)
    return (jnp.dot(h2.astype(jnp.bfloat16), w3, preferred_element_type=jnp.float32)
            + p["b3"])


if __name__ == "__main__":
    # Small config consistent with the module:
    #   features_len = 2, final_out_channels = 16  ->  F = 32
    #   disc_hid_dim = 64, batch = 8
    features_len = 2
    final_out_channels = 16
    disc_hid_dim = 64
    batch = 8
    in_dim = features_len * final_out_channels

    key = jax.random.PRNGKey(0)
    kx, kp = jax.random.split(key)
    x = jax.random.normal(kx, (batch, in_dim), jnp.float32)
    params = init_discriminator_params(kp, in_dim, disc_hid_dim, out_dim=2)

    out = jax.block_until_ready(discriminator_forward(x, params))
    assert out.shape == (batch, 2)

    # Tight check against the bf16-matmul / f32-accumulate reference (same math
    # as the kernel) and a loose sanity check against the pure-f32 reference.
    ref_bf16 = _reference_forward_bf16(x, params)
    ref_f32 = _reference_forward_f32(x, params)
    assert jnp.allclose(out, ref_bf16, atol=1e-2, rtol=1e-2)
    assert jnp.allclose(out, ref_f32, atol=1.5e-1, rtol=1.5e-1)

    print("KERNEL_OK")
</pallas_src>

<mosaic_0001>
module attributes {stable_mosaic.version = 11 : i64} {
  func.func @_disc_mlp_kernel(%arg0: i32, %arg1: memref<16x32xbf16, #tpu.memory_space<vmem>>, %arg2: memref<32x64xbf16, #tpu.memory_space<vmem>>, %arg3: memref<1x64xf32, #tpu.memory_space<vmem>>, %arg4: memref<64x64xbf16, #tpu.memory_space<vmem>>, %arg5: memref<1x64xf32, #tpu.memory_space<vmem>>, %arg6: memref<64x128xbf16, #tpu.memory_space<vmem>>, %arg7: memref<1x128xf32, #tpu.memory_space<vmem>>, %arg8: memref<16x128xf32, #tpu.memory_space<vmem>>) attributes {dimension_semantics = [#tpu.dimension_semantics<parallel>], iteration_bounds = array<i64: 1>, scalar_prefetch = 0 : i64, scratch_operands = 0 : i64, tpu.core_type = #tpu.core_type<tc>, window_params = [{transform_indices = @transform_0, window_bounds = array<i64: 16, 32>}, {pipeline_mode = #tpu.pipeline_mode<synchronous>, transform_indices = @transform_1, window_bounds = array<i64: 32, 64>}, {pipeline_mode = #tpu.pipeline_mode<synchronous>, transform_indices = @transform_2, window_bounds = array<i64: 1, 64>}, {pipeline_mode = #tpu.pipeline_mode<synchronous>, transform_indices = @transform_3, window_bounds = array<i64: 64, 64>}, {pipeline_mode = #tpu.pipeline_mode<synchronous>, transform_indices = @transform_4, window_bounds = array<i64: 1, 64>}, {pipeline_mode = #tpu.pipeline_mode<synchronous>, transform_indices = @transform_5, window_bounds = array<i64: 64, 128>}, {pipeline_mode = #tpu.pipeline_mode<synchronous>, transform_indices = @transform_6, window_bounds = array<i64: 1, 128>}, {transform_indices = @transform_7, window_bounds = array<i64: 16, 128>}]} {
    %c0 = arith.constant 0 : index
    %c0_0 = arith.constant 0 : index
    %0 = vector.load %arg1[%c0, %c0_0] : memref<16x32xbf16, #tpu.memory_space<vmem>>, vector<16x32xbf16>
    %c0_1 = arith.constant 0 : index
    %c0_2 = arith.constant 0 : index
    %1 = vector.load %arg2[%c0_1, %c0_2] : memref<32x64xbf16, #tpu.memory_space<vmem>>, vector<32x64xbf16>
    %cst = arith.constant dense<0.000000e+00> : vector<16x64xf32>
    %2 = tpu.matmul %0, %1, %cst {dimension_numbers = #tpu.dot_dimension_numbers<[1], [0], [0], [1], [0, 0, 1, 1], [], []>} : vector<16x32xbf16>, vector<32x64xbf16>, vector<16x64xf32> -> vector<16x64xf32>
    %c0_3 = arith.constant 0 : index
    %c0_4 = arith.constant 0 : index
    %3 = vector.load %arg3[%c0_3, %c0_4] : memref<1x64xf32, #tpu.memory_space<vmem>>, vector<1x64xf32>
    %4 = vector.broadcast %3 : vector<1x64xf32> to vector<16x64xf32>
    %5 = arith.addf %2, %4 : vector<16x64xf32>
    %cst_5 = arith.constant 0.000000e+00 : f32
    %6 = vector.broadcast %cst_5 : f32 to vector<16x64xf32>
    %7 = arith.maximumf %5, %6 : vector<16x64xf32>
    %8 = arith.truncf %7 : vector<16x64xf32> to vector<16x64xbf16>
    %c0_6 = arith.constant 0 : index
    %c0_7 = arith.constant 0 : index
    %9 = vector.load %arg4[%c0_6, %c0_7] : memref<64x64xbf16, #tpu.memory_space<vmem>>, vector<64x64xbf16>
    %cst_8 = arith.constant dense<0.000000e+00> : vector<16x64xf32>
    %10 = tpu.matmul %8, %9, %cst_8 {dimension_numbers = #tpu.dot_dimension_numbers<[1], [0], [0], [1], [0, 0, 1, 1], [], []>} : vector<16x64xbf16>, vector<64x64xbf16>, vector<16x64xf32> -> vector<16x64xf32>
    %c0_9 = arith.constant 0 : index
    %c0_10 = arith.constant 0 : index
    %11 = vector.load %arg5[%c0_9, %c0_10] : memref<1x64xf32, #tpu.memory_space<vmem>>, vector<1x64xf32>
    %12 = vector.broadcast %11 : vector<1x64xf32> to vector<16x64xf32>
    %13 = arith.addf %10, %12 : vector<16x64xf32>
    %cst_11 = arith.constant 0.000000e+00 : f32
    %14 = vector.broadcast %cst_11 : f32 to vector<16x64xf32>
    %15 = arith.maximumf %13, %14 : vector<16x64xf32>
    %16 = arith.truncf %15 : vector<16x64xf32> to vector<16x64xbf16>
    %c0_12 = arith.constant 0 : index
    %c0_13 = arith.constant 0 : index
    %17 = vector.load %arg6[%c0_12, %c0_13] : memref<64x128xbf16, #tpu.memory_space<vmem>>, vector<64x128xbf16>
    %cst_14 = arith.constant dense<0.000000e+00> : vector<16x128xf32>
    %18 = tpu.matmul %16, %17, %cst_14 {dimension_numbers = #tpu.dot_dimension_numbers<[1], [0], [0], [1], [0, 0, 1, 1], [], []>} : vector<16x64xbf16>, vector<64x128xbf16>, vector<16x128xf32> -> vector<16x128xf32>
    %c0_15 = arith.constant 0 : index
    %c0_16 = arith.constant 0 : index
    %19 = vector.load %arg7[%c0_15, %c0_16] : memref<1x128xf32, #tpu.memory_space<vmem>>, vector<1x128xf32>
    %20 = vector.broadcast %19 : vector<1x128xf32> to vector<16x128xf32>
    %21 = arith.addf %18, %20 : vector<16x128xf32>
    %c0_17 = arith.constant 0 : index
    %c0_18 = arith.constant 0 : index
    %22 = vector.load %arg8[%c0_17, %c0_18] : memref<16x128xf32, #tpu.memory_space<vmem>>, vector<16x128xf32>
    tpu.vector_store %arg8[%c0_17, %c0_18], %21 {strides = array<i32>} : memref<16x128xf32, #tpu.memory_space<vmem>>, vector<16x128xf32>,
    return
  }
  func.func @transform_0(%arg0: i32) -> (i32, i32) {
    %c0_i32 = arith.constant 0 : i32
    %c0_i32_0 = arith.constant 0 : i32
    return %arg0, %c0_i32 : i32, i32
  }
  func.func @transform_1(%arg0: i32) -> (i32, i32) {
    %c0_i32 = arith.constant 0 : i32
    %c0_i32_0 = arith.constant 0 : i32
    %c0_i32_1 = arith.constant 0 : i32
    return %c0_i32, %c0_i32_0 : i32, i32
  }
  func.func @transform_2(%arg0: i32) -> (i32, i32) {
    %c0_i32 = arith.constant 0 : i32
    %c0_i32_0 = arith.constant 0 : i32
    %c0_i32_1 = arith.constant 0 : i32
    return %c0_i32, %c0_i32_0 : i32, i32
  }
  func.func @transform_3(%arg0: i32) -> (i32, i32) {
    %c0_i32 = arith.constant 0 : i32
    %c0_i32_0 = arith.constant 0 : i32
    %c0_i32_1 = arith.constant 0 : i32
    return %c0_i32, %c0_i32_0 : i32, i32
  }
  func.func @transform_4(%arg0: i32) -> (i32, i32) {
    %c0_i32 = arith.constant 0 : i32
    %c0_i32_0 = arith.constant 0 : i32
    %c0_i32_1 = arith.constant 0 : i32
    return %c0_i32, %c0_i32_0 : i32, i32
  }
  func.func @transform_5(%arg0: i32) -> (i32, i32) {
    %c0_i32 = arith.constant 0 : i32
    %c0_i32_0 = arith.constant 0 : i32
    %c0_i32_1 = arith.constant 0 : i32
    return %c0_i32, %c0_i32_0 : i32, i32
  }
  func.func @transform_6(%arg0: i32) -> (i32, i32) {
    %c0_i32 = arith.constant 0 : i32
    %c0_i32_0 = arith.constant 0 : i32
    %c0_i32_1 = arith.constant 0 : i32
    return %c0_i32, %c0_i32_0 : i32, i32
  }
  func.func @transform_7(%arg0: i32) -> (i32, i32) {
    %c0_i32 = arith.constant 0 : i32
    %c0_i32_0 = arith.constant 0 : i32
    return %arg0, %c0_i32 : i32, i32
  }
}

</mosaic_0001>

<bundles_post_ra>
// kernel: discriminator_forward.1
= control target key start
LH: loop header
LB: loop body
LE: loop exit
PB: predicated region body
PF: predicated region fallthrough
CT: control target
= control target key end

     0   :  { %v356_v0 = vmov 0.0   ;;  %vm357_vm0 = vmmov 0   ;;  %vm57_vm1 = vcmask 261120   ;;  %vm144_vm2 = vcmask 523264   ;;  %s451_s1 = inlined_call_operand.vmem [shape: bf16[32,64], index: 1, kind: input, shape index: {}]   ;;  %s452_s3 = inlined_call_operand.vmem [shape: bf16[64,64], index: 3, kind: input, shape index: {}]   ;;  %s453_s0 = inlined_call_operand.vmem [shape: bf16[16,32], index: 0, kind: input, shape index: {}]   ;;  %s454_s5 = inlined_call_operand.vmem [shape: bf16[64,128], index: 5, kind: input, shape index: {}]   ;;  %s455_s2 = inlined_call_operand.vmem [shape: f32[1,64], index: 2, kind: input, shape index: {}]   ;;  %s456_s4 = inlined_call_operand.vmem [shape: f32[1,64], index: 4, kind: input, shape index: {}]   ;;  %s457_s6 = inlined_call_operand.vmem [shape: f32[1,128], index: 6, kind: input, shape index: {}]   ;;  %s458_s7 = inlined_call_operand.vmem [shape: f32[16,128], index: 7, kind: output, shape index: {}]  }
   0x1   :  { %311 = vmatprep.subr.bf16.mxu0 %v356_v0  ;;  %v345_v1 = vld [vmem:[%s451_s1] sm:$0xff]   ;;  %315 = vmatprep.mubr.msk.bf16.mxu0 %vm357_vm0, %v356_v0  ;;  %v346_v2 = vld [vmem:[%s451_s1 + $0x8] sm:$0xff]   ;;  %v350_v6 = vld [vmem:[%s452_s3 + $0x10] sm:$0xff]  }
   0x2   :  { %319 = vmatprep.subr.bf16.mxu1 %v356_v0  ;;  %327 = vmatprep.mubr.msk.bf16.mxu1 %vm357_vm0, %v356_v0  ;;  %v348_v3 = vld [vmem:[%s452_s3] sm:$0xff]   ;;  %v349_v5 = vld [vmem:[%s452_s3 + $0x8] sm:$0xff]   ;;  %v351_v7 = vld [vmem:[%s452_s3 + $0x18] sm:$0xff]  }
   0x3   :  { %312 = vmatpush3.bf16.msra.mxu0 %v345_v1  ;;  %v347_v4 = vld [vmem:[%s453_s0] sm:$0xff]   ;;  %320 = vmatpush3.bf16.msra.mxu1 %v348_v3  ;;  %v353_v9 = vld [vmem:[%s454_s5 + $0x8] sm:$0xff]   ;;  %v354_v20 = vld [vmem:[%s454_s5 + $0x10] sm:$0xff]  }
   0x4   :  { %313 = vmatprep.subr.bf16.mxu0 %v356_v0  ;;  %321 = vmatprep.subr.bf16.mxu1 %v356_v0  ;;  %v352_v8 = vld [vmem:[%s454_s5] sm:$0xff]   ;;  %v355_v21 = vld [vmem:[%s454_s5 + $0x18] sm:$0xff]  }
   0x5   :  { %v281_v10 = vld [vmem:[%s455_s2] ss:$0 sm:$0xff] }
   0x6   :  { %v286_v22 = vld [vmem:[%s456_s4] ss:$0 sm:$0xff] }
   0x7   :  { %314 = vmatpush3.bf16.msra.mxu0 %v346_v2  ;;  %322 = vmatpush3.bf16.msra.mxu1 %v349_v5  ;;  %v292_v32 = vld [vmem:[%s457_s6] ss:$0 sm:$0xff] }
   0x8   :  { %331 = vmatprep.subr.bf16.mxu0 %v356_v0  ;;  %323 = vmatprep.subr.bf16.mxu1 %v356_v0 }
   0xa   :  { %316 = vmatmul.mubr.msk.bf16.vlgmr.msra.gmra.mrb[0].mxu0 %vm57_vm1, %v347_v4 }
   0xb   :  { %339 = vmatprep.mubr.msk.bf16.mxu0 %vm357_vm0, %v356_v0  ;;  %324 = vmatpush3.bf16.msra.mxu1 %v350_v6 }
   0xc   :  { %325 = vmatprep.subr.bf16.mxu1 %v356_v0  ;;  %332 = vmatpush3.bf16.msra.mxu0 %v352_v8 }
   0xd   :  { %333 = vmatprep.subr.bf16.mxu0 %v356_v0 }
   0xf   :  { %326 = vmatpush3.bf16.msra.mxu1 %v351_v7 }
  0x10   :  { %334 = vmatpush3.bf16.msra.mxu0 %v353_v9 }
  0x11   :  { %335 = vmatprep.subr.bf16.mxu0 %v356_v0 }
  0x14   :  { %336 = vmatpush3.bf16.msra.mxu0 %v354_v20 }
  0x15   :  { %337 = vmatprep.subr.bf16.mxu0 %v356_v0 }
  0x18   :  { %338 = vmatpush3.bf16.msra.mxu0 %v355_v21 }
  0xdd   :  { %v95_v11 = vpop.f32.mrb[0].mxu0 }
  0xde   :  { %v96_v12 = vadd.f32 %v281_v10, %v95_v11  ;;  %v317_v13 = vpop.f32.mrb[1].mxu0 }
  0xdf   :  { %v98_v14 = vpop.f32.mrb[2].mxu0 }
  0xe0   :  { %v99_v15 = vadd.f32 %v281_v10, %v98_v14  ;;  %v318_v16 = vpop.f32.mrb[3].mxu0  ;;  %v102_v17 = vmax.f32 %v96_v12, 0.0 }
  0xe2   :  { %v103_v18 = vmax.f32 %v99_v15, 0.0 }
  0xe4   :  { %v104_v19 = vpack.c.bf16 %v103_v18, %v102_v17 }
  0xe6   :  { %328 = vmatmul.mubr.msk.bf16.vlgmr.msra.gmra.mrb[0].mxu1 %vm144_vm2, %v104_v19 }
 0x1b9   :  { %v182_v23 = vpop.f32.mrb[0].mxu1 }
 0x1ba   :  { %v183_v24 = vadd.f32 %v286_v22, %v182_v23  ;;  %v329_v25 = vpop.f32.mrb[1].mxu1 }
 0x1bb   :  { %v185_v26 = vpop.f32.mrb[2].mxu1 }
 0x1bc   :  { %v186_v27 = vadd.f32 %v286_v22, %v185_v26  ;;  %v330_v28 = vpop.f32.mrb[3].mxu1  ;;  %v189_v29 = vmax.f32 %v183_v24, 0.0 }
 0x1be   :  { %v190_v30 = vmax.f32 %v186_v27, 0.0 }
 0x1c0   :  { %v191_v31 = vpack.c.bf16 %v190_v30, %v189_v29 }
 0x1c2   :  { %340 = vmatmul.mubr.msk.bf16.vlgmr.msra.gmra.mrb[4].mxu0 %vm144_vm2, %v191_v31 }
 0x295   :  { %v268_v33 = vpop.f32.mrb[4].mxu0 }
 0x296   :  { %v269_v34 = vadd.f32 %v292_v32, %v268_v33  ;;  %v341_v35 = vpop.f32.mrb[5].mxu0 }
 0x297   :  { %v271_v36 = vpop.f32.mrb[6].mxu0 }
 0x298   :  { %275 = vst [vmem:[%s458_s7] sm:$0xff] %v269_v34  ;;  %v272_v37 = vadd.f32 %v292_v32, %v271_v36  ;;  %v342_v38 = vpop.f32.mrb[7].mxu0 }
 0x29a   :  { %276 = vst [vmem:[%s458_s7 + $0x8] sm:$0xff] %v272_v37 }

</bundles_post_ra>
